<compile_context>
chip_gen: v6e
topology: v6e:2x2x1
jax: 0.10.0
libtpu: 0.0.40
codegen_flags: <defaults>
</compile_context>

<pallas_src>
import jax
import jax.numpy as jnp
from jax import lax
from jax.experimental import pallas as pl
from jax.experimental.pallas import tpu as pltpu

LANES = 128
SUBLANE = 8
CHUNK = 32              # rows per streaming step (4 vregs of f32 per value)
MAX_TILE_ROWS = 4096    # 4096*128*4B = 2 MiB per f32 block (double-buffered OK)


def _round_up(n, m):
    return ((n + m - 1) // m) * m


def _default_num_splits():
    """2 TensorCores per chip on v7x, 1 on v5e/v6e."""
    try:
        kind = jax.devices()[0].device_kind.lower()
    except Exception:
        return 1
    return 2 if "v7" in kind else 1


def _pow_weight(q, gamma):
    """(1 - p_t)**gamma without a float pow when gamma is a small integer."""
    g = float(gamma)
    if g == int(g) and 0 <= int(g) <= 16:
        n = int(g)
        if n == 0:
            return jnp.ones_like(q)
        res, base = None, q
        while n:
            if n & 1:
                res = base if res is None else res * base
            n >>= 1
            if n:
                base = base * base
        return res
    return q ** g  # non-integer gamma -> EUP pow (log + exp)


def _make_focal_kernel(gamma, tile_rows, chunk):
    n_chunks = tile_rows // chunk
    unroll = 4 if n_chunks >= 4 else n_chunks

    def kernel(x_ref, t_ref, o_ref):
        # grid = (num_splits, tiles_per_split); axis 1 is the reduction axis,
        # so the (8,128) output block is resident across it.
        @pl.when(pl.program_id(1) == 0)
        def _init():
            o_ref[...] = jnp.zeros_like(o_ref)

        zeros = jnp.zeros((SUBLANE, LANES), jnp.float32)

        def body(c, carry):
            a0, a1 = carry
            r0 = pl.multiple_of(c * chunk, chunk)
            x = x_ref[pl.ds(r0, chunk), :].astype(jnp.float32)
            t = t_ref[pl.ds(r0, chunk), :].astype(jnp.float32)

            # Numerically-stable BCE-with-logits (reduction='none'):
            #   bce = max(x, 0) - x*t + log1p(exp(-|x|))
            bce = jnp.maximum(x, 0.0) - x * t + jnp.log1p(jnp.exp(-jnp.abs(x)))
            p_t = jnp.exp(-bce)
            focal = _pow_weight(1.0 - p_t, gamma) * bce
            # alpha is None for this module config -> no scaling here.

            # Fold the chunk's (8,128) row-groups into two independent
            # accumulators (two short VPU add chains instead of one long one).
            for i in range(0, chunk // SUBLANE, 2):
                a0 = a0 + focal[(i + 0) * SUBLANE:(i + 1) * SUBLANE, :]
                a1 = a1 + focal[(i + 1) * SUBLANE:(i + 2) * SUBLANE, :]
            return a0, a1

        a0, a1 = lax.fori_loop(0, n_chunks, body, (zeros, zeros),
                               unroll=unroll)
        o_ref[...] += a0 + a1

    return kernel


def focal_loss_pallas(inputs, targets, gamma=4.0, alpha=None, reduction='mean',
                      *, logits=True, num_splits=None,
                      max_tile_rows=MAX_TILE_ROWS):
    if not logits:
        # TODO(synk): logits=False (probability inputs) branch not implemented.
        raise NotImplementedError("only logits=True is implemented")
    assert inputs.shape == targets.shape
    total = int(inputs.size)
    if num_splits is None:
        num_splits = _default_num_splits()

    # Native dtypes straight into the kernel: no wrapper-side astype copies.
    x_flat = inputs.reshape(-1)
    t_flat = targets.reshape(-1)

    rows = pl.cdiv(total, LANES)
    tile_rows = min(max_tile_rows,
                    _round_up(pl.cdiv(rows, num_splits), CHUNK))
    tiles_per_split = pl.cdiv(rows, num_splits * tile_rows)
    rows_padded = num_splits * tiles_per_split * tile_rows
    padded_total = rows_padded * LANES

    if padded_total != total:
        pad = padded_total - total
        # Pad with an (x, t) pair whose focal loss is exactly 0:
        #   x = +100 logit, t = 1  ->  bce = 0, p_t = 1, (1-p_t)^gamma = 0.
        # This removes the need for any in-kernel tail mask.
        x_flat = jnp.pad(x_flat, (0, pad), constant_values=100.0)
        t_flat = jnp.pad(t_flat, (0, pad), constant_values=1)

    x2 = x_flat.reshape(rows_padded, LANES)
    t2 = t_flat.reshape(rows_padded, LANES)

    kernel = _make_focal_kernel(gamma, tile_rows, CHUNK)

    partials = pl.pallas_call(
        kernel,
        out_shape=jax.ShapeDtypeStruct((num_splits * SUBLANE, LANES),
                                       jnp.float32),
        grid_spec=pltpu.PrefetchScalarGridSpec(
            num_scalar_prefetch=0,
            grid=(num_splits, tiles_per_split),
            in_specs=[
                pl.BlockSpec((tile_rows, LANES),
                             lambda s, k: (s * tiles_per_split + k, 0)),
                pl.BlockSpec((tile_rows, LANES),
                             lambda s, k: (s * tiles_per_split + k, 0)),
            ],
            out_specs=pl.BlockSpec((SUBLANE, LANES), lambda s, k: (s, 0)),
        ),
        compiler_params=pltpu.CompilerParams(
            dimension_semantics=("parallel", "arbitrary"),
        ),
    )(x2, t2)

    # Single tiny cross-lane reduction over num_splits*8*128 partials.
    loss = jnp.sum(partials)
    if alpha is not None:
        loss = alpha * loss
    if reduction == 'mean':
        return loss / total
    elif reduction == 'sum':
        return loss
    # TODO(synk): reduction='none' (elementwise output) not implemented here.
    raise NotImplementedError("reduction must be 'mean' or 'sum'")


def focal_loss_ref(inputs, targets, gamma=4.0):
    x = inputs.astype(jnp.float32)
    t = targets.astype(jnp.float32)
    bce = jnp.maximum(x, 0.0) - x * t + jnp.log1p(jnp.exp(-jnp.abs(x)))
    p_t = jnp.exp(-bce)
    return jnp.mean((1.0 - p_t) ** gamma * bce)


if __name__ == "__main__":
    key = jax.random.PRNGKey(0)
    k1, k2 = jax.random.split(key)
    # NCHW logits map, consistent with a typical conv output.
    x = jax.random.normal(k1, (2, 4, 16, 16), dtype=jnp.float32) * 2.0
    targets = (jax.random.uniform(k2, (2, 4, 16, 16)) > 0.5).astype(jnp.float32)

    loss = focal_loss_pallas(x, targets, gamma=4.0)
    loss = jax.block_until_ready(loss)

    ref = focal_loss_ref(x, targets, gamma=4.0)
    assert jnp.allclose(loss, ref, rtol=1e-4, atol=1e-6), (loss, ref)

    print("KERNEL_OK")
</pallas_src>

<mosaic_0001>
module attributes {stable_mosaic.version = 11 : i64} {
  func.func @kernel(%arg0: i32, %arg1: i32, %arg2: memref<32x128xf32, #tpu.memory_space<vmem>>, %arg3: memref<32x128xf32, #tpu.memory_space<vmem>>, %arg4: memref<8x128xf32, #tpu.memory_space<vmem>>) attributes {dimension_semantics = [#tpu.dimension_semantics<parallel>, #tpu.dimension_semantics<arbitrary>], iteration_bounds = array<i64: 1, 1>, scalar_prefetch = 0 : i64, scratch_operands = 0 : i64, tpu.core_type = #tpu.core_type<tc>, window_params = [{transform_indices = @transform_0, window_bounds = array<i64: 32, 128>}, {transform_indices = @transform_1, window_bounds = array<i64: 32, 128>}, {transform_indices = @transform_2, window_bounds = array<i64: 8, 128>}]} {
    %c0_i32 = arith.constant 0 : i32
    %0 = arith.cmpi eq, %arg1, %c0_i32 : i32
    %1 = arith.extui %0 : i1 to i32
    %c0_i32_0 = arith.constant 0 : i32
    %2 = arith.cmpi ne, %1, %c0_i32_0 : i32
    scf.if %2 {
      %cst_11 = arith.constant 0.000000e+00 : f32
      %40 = vector.broadcast %cst_11 : f32 to vector<8x128xf32>
      %c0_12 = arith.constant 0 : index
      %c0_13 = arith.constant 0 : index
      %41 = vector.load %arg4[%c0_12, %c0_13] : memref<8x128xf32, #tpu.memory_space<vmem>>, vector<8x128xf32>
      tpu.vector_store %arg4[%c0_12, %c0_13], %40 {strides = array<i32>} : memref<8x128xf32, #tpu.memory_space<vmem>>, vector<8x128xf32>,
    } else {
    }
    %cst = arith.constant 0.000000e+00 : f32
    %3 = vector.broadcast %cst : f32 to vector<8x128xf32>
    %c0_i32_1 = arith.constant 0 : i32
    %c32_i32 = arith.constant 32 : i32
    %4 = arith.muli %c0_i32_1, %c32_i32 : i32
    %5 = tpu.assume_multiple %4, 32 : i32
    %6 = arith.index_cast %5 : i32 to index
    %c0 = arith.constant 0 : index
    %7 = vector.load %arg2[%6, %c0] : memref<32x128xf32, #tpu.memory_space<vmem>>, vector<32x128xf32>
    %8 = arith.index_cast %5 : i32 to index
    %c0_2 = arith.constant 0 : index
    %9 = vector.load %arg3[%8, %c0_2] : memref<32x128xf32, #tpu.memory_space<vmem>>, vector<32x128xf32>
    %cst_3 = arith.constant 0.000000e+00 : f32
    %10 = vector.broadcast %cst_3 : f32 to vector<32x128xf32>
    %11 = arith.maximumf %7, %10 : vector<32x128xf32>
    %12 = arith.mulf %7, %9 : vector<32x128xf32>
    %13 = arith.subf %11, %12 : vector<32x128xf32>
    %14 = math.absf %7 : vector<32x128xf32>
    %cst_4 = arith.constant 0.000000e+00 : f32
    %15 = vector.broadcast %cst_4 : f32 to vector<32x128xf32>
    %16 = arith.subf %15, %14 : vector<32x128xf32>
    %17 = math.exp %16 : vector<32x128xf32>
    %18 = math.log1p %17 : vector<32x128xf32>
    %19 = arith.addf %13, %18 : vector<32x128xf32>
    %cst_5 = arith.constant 0.000000e+00 : f32
    %20 = vector.broadcast %cst_5 : f32 to vector<32x128xf32>
    %21 = arith.subf %20, %19 : vector<32x128xf32>
    %22 = math.exp %21 : vector<32x128xf32>
    %cst_6 = arith.constant 1.000000e+00 : f32
    %23 = vector.broadcast %cst_6 : f32 to vector<32x128xf32>
    %24 = arith.subf %23, %22 : vector<32x128xf32>
    %25 = arith.mulf %24, %24 : vector<32x128xf32>
    %26 = arith.mulf %25, %25 : vector<32x128xf32>
    %27 = arith.mulf %26, %19 : vector<32x128xf32>
    %28 = vector.extract_strided_slice %27 {offsets = [0, 0], sizes = [8, 128], strides = [1, 1]} : vector<32x128xf32> to vector<8x128xf32>
    %29 = arith.addf %3, %28 : vector<8x128xf32>
    %30 = vector.extract_strided_slice %27 {offsets = [8, 0], sizes = [8, 128], strides = [1, 1]} : vector<32x128xf32> to vector<8x128xf32>
    %31 = arith.addf %3, %30 : vector<8x128xf32>
    %32 = vector.extract_strided_slice %27 {offsets = [16, 0], sizes = [8, 128], strides = [1, 1]} : vector<32x128xf32> to vector<8x128xf32>
    %33 = arith.addf %29, %32 : vector<8x128xf32>
    %34 = vector.extract_strided_slice %27 {offsets = [24, 0], sizes = [8, 128], strides = [1, 1]} : vector<32x128xf32> to vector<8x128xf32>
    %35 = arith.addf %31, %34 : vector<8x128xf32>
    %c1_i32 = arith.constant 1 : i32
    %c0_7 = arith.constant 0 : index
    %c0_8 = arith.constant 0 : index
    %36 = vector.load %arg4[%c0_7, %c0_8] : memref<8x128xf32, #tpu.memory_space<vmem>>, vector<8x128xf32>
    %37 = arith.addf %33, %35 : vector<8x128xf32>
    %38 = arith.addf %36, %37 : vector<8x128xf32>
    %c0_9 = arith.constant 0 : index
    %c0_10 = arith.constant 0 : index
    %39 = vector.load %arg4[%c0_9, %c0_10] : memref<8x128xf32, #tpu.memory_space<vmem>>, vector<8x128xf32>
    tpu.vector_store %arg4[%c0_9, %c0_10], %38 {strides = array<i32>} : memref<8x128xf32, #tpu.memory_space<vmem>>, vector<8x128xf32>,
    return
  }
  func.func @transform_0(%arg0: i32, %arg1: i32) -> (i32, i32) {
    %c1_i32 = arith.constant 1 : i32
    %0 = arith.muli %arg0, %c1_i32 : i32
    %1 = arith.addi %0, %arg1 : i32
    %c0_i32 = arith.constant 0 : i32
    %c0_i32_0 = arith.constant 0 : i32
    return %1, %c0_i32 : i32, i32
  }
  func.func @transform_1(%arg0: i32, %arg1: i32) -> (i32, i32) {
    %c1_i32 = arith.constant 1 : i32
    %0 = arith.muli %arg0, %c1_i32 : i32
    %1 = arith.addi %0, %arg1 : i32
    %c0_i32 = arith.constant 0 : i32
    %c0_i32_0 = arith.constant 0 : i32
    return %1, %c0_i32 : i32, i32
  }
  func.func @transform_2(%arg0: i32, %arg1: i32) -> (i32, i32) {
    %c0_i32 = arith.constant 0 : i32
    %c0_i32_0 = arith.constant 0 : i32
    return %arg0, %c0_i32 : i32, i32
  }
}

</mosaic_0001>

<bundles_post_ra>
// kernel: tpu_custom_call.1
= control target key start
LH: loop header
LB: loop body
LE: loop exit
PB: predicated region body
PF: predicated region fallthrough
CT: control target
= control target key end

     0   :  { %7 = vsyncpa [#allocation3], 0  ;;  %s332_s0 = inlined_call_operand.hbm [shape: f32[32,128], index: 0, kind: input, shape index: {}]   ;;  %s333_s1 = inlined_call_operand.hbm [shape: f32[32,128], index: 1, kind: input, shape index: {}]   ;;  %s334_s2 = inlined_call_operand.hbm [shape: f32[8,128], index: 2, kind: output, shape index: {}]  }
   0x1   :  { %8 = vsyncpa [#allocation6], 0 }
   0x2   :  { %9 = vsyncpa [#allocation4], 0  ;;  %s281_s9 = smov [#allocation2]  }
   0x3   :  { %s19_s10 = sshll.u32 %s281_s9, 4  ;;  %s20_s10 = int_to_ptr.vmem [resolvable:$true] %s19_s10 }
   0x4   :  { %s223_s11 = scalar_lea.vmem %s20_s10, 512  ;;  %p228_p1 = scmp.lt.s32.totalorder %s20_s10, %s20_s10 }
   0x5   :  { %p224_p0 = scmp.ne.s32.totalorder %s20_s10, %s223_s11  ;;  %p229_p2 = scmp.lt.s32.totalorder %s223_s11, %s223_s11 }
   0x7   :  { %p230_p3 = por %p229_p2, %p228_p1 }
   0x9   :  { %p231_p4 = pnand %p230_p3, %p224_p0 }
   0xb   :  { %234 = shalt.err (!%p231_p4)
}
   0xc   :  { %s282_s12 = smov 128   ;;  %s283_s13 = smov 8  }
   0xd   :  { %25 = dma.hbm_to_vmem [thread:$0]  %s332_s0, 512, %s20_s10, [#allocation3], %s282_s12, %s282_s12, %s283_s13  }
   0xe   :  { %s284_s16 = smov [#allocation5]  }
   0xf   :  { %s35_s17 = sshll.u32 %s284_s16, 4  ;;  %s36_s17 = int_to_ptr.vmem [resolvable:$true] %s35_s17 }
  0x10   :  { %s243_s18 = scalar_lea.vmem %s36_s17, 512  ;;  %p248_p6 = scmp.lt.s32.totalorder %s36_s17, %s36_s17 }
  0x11   :  { %p244_p5 = scmp.ne.s32.totalorder %s36_s17, %s243_s18  ;;  %p249_p7 = scmp.lt.s32.totalorder %s243_s18, %s243_s18 }
  0x13   :  { %p250_p8 = por %p249_p7, %p248_p6 }
  0x15   :  { %p251_p9 = pnand %p250_p8, %p244_p5 }
  0x17   :  { %254 = shalt.err (!%p251_p9)
}
  0x18   :  { %41 = dma.hbm_to_vmem [thread:$0]  %s333_s1, 512, %s36_s17, [#allocation6], %s282_s12, %s282_s12, %s283_s13  }
  0x19   :  { %275 = dma.done.wait [#allocation3], 512  }
  0x1a   :  { %276 = vsyncadd [#allocation3], 4294966784 }
  0x1b   :  { %277 = dma.done.wait [#allocation6], 512  }
  0x1c   :  { %278 = vsyncadd [#allocation6], 4294966784  ;;  %v57_v0 = vld [vmem:[#allocation2] sm:$0xff]  ;;  %v58_v1 = vld [vmem:[#allocation2 + $0x8] sm:$0xff]  ;;  %s285_s0 = smov [#allocation7]  }
  0x1d   :  { %v307_v2 = vld [vmem:[#allocation2 + $0x10] sm:$0xff]  ;;  %v309_v3 = vld [vmem:[#allocation2 + $0x18] sm:$0xff]  ;;  %v77_v4 = vand.u32 2147483647, %v57_v0  ;;  %v78_v5 = vand.u32 2147483647, %v58_v1 }
  0x1e   :  { %v79_v6 = vand.u32 2147483647, %v307_v2  ;;  %v80_v7 = vand.u32 2147483647, %v309_v3  ;;  %v61_v26 = vld [vmem:[#allocation5] sm:$0xff]  ;;  %v62_v28 = vld [vmem:[#allocation5 + $0x8] sm:$0xff] }
  0x1f   :  { %v81_v8 = vsub.f32 0.0, %v77_v4  ;;  %v82_v9 = vsub.f32 0.0, %v78_v5  ;;  %v63_v29 = vld [vmem:[#allocation5 + $0x10] sm:$0xff]  ;;  %v64_v32 = vld [vmem:[#allocation5 + $0x18] sm:$0xff]  ;;  %v65_v33 = vmax.f32 %v57_v0, 0.0  ;;  %v69_v34 = vmul.f32 %v61_v26, %v57_v0  ;;  %s175_s1 = sshll.u32 %s285_s0, 4  ;;  %s176_s1 = int_to_ptr.vmem [resolvable:$true] %s175_s1 }
  0x20   :  { %v83_v10 = vsub.f32 0.0, %v79_v6  ;;  %v84_v11 = vsub.f32 0.0, %v80_v7  ;;  %v66_v37 = vmax.f32 %v58_v1, 0.0  ;;  %v70_v38 = vmul.f32 %v62_v28, %v58_v1  ;;  %s255_s21 = scalar_lea.vmem %s176_s1, 128  ;;  %p260_p11 = scmp.lt.s32.totalorder %s176_s1, %s176_s1 }
  0x21   :  { %v85_v12 = vmul.f32 1.442695, %v81_v8  ;;  %v87_v13 = vmul.f32 1.442695, %v82_v9  ;;  %v67_v41 = vmax.f32 %v307_v2, 0.0  ;;  %v71_v42 = vmul.f32 %v63_v29, %v307_v2  ;;  %p256_p10 = scmp.ne.s32.totalorder %s176_s1, %s255_s21  ;;  %p261_p12 = scmp.lt.s32.totalorder %s255_s21, %s255_s21 }
  0x22   :  { %v89_v14 = vmul.f32 1.442695, %v83_v10  ;;  %v91_v15 = vmul.f32 1.442695, %v84_v11  ;;  %v68_v44 = vmax.f32 %v309_v3, 0.0  ;;  %v72_v45 = vmul.f32 %v64_v32, %v309_v3 }
  0x23   :  { %191 = vpow2.f32 %v85_v12  ;;  %v73_v49 = vsub.f32 %v65_v33, %v69_v34  ;;  %v74_v54 = vsub.f32 %v66_v37, %v70_v38  ;;  %v75_v59 = vsub.f32 %v67_v41, %v71_v42  ;;  %p262_p13 = por %p261_p12, %p260_p11 }
  0x24   :  { %193 = vpow2.f32 %v87_v13  ;;  %v76_v1 = vsub.f32 %v68_v44, %v72_v45 }
  0x25   :  { %195 = vpow2.f32 %v89_v14  ;;  %p263_p0 = pnand %p262_p13, %p256_p10 }
  0x26   :  { %197 = vpow2.f32 %v91_v15 }
  0x30   :  { %v192_v16 = vpop.eup %191 }
  0x31   :  { %v194_v17 = vpop.eup %193  ;;  %v93_v18 = vadd.f32 1.0, %v192_v16  ;;  %v96_v24 = vmul.f32 -0.5, %v192_v16  ;;  %v99_v35 = vand.u32 2147483647, %v192_v16 }
  0x32   :  { %v196_v19 = vpop.eup %195  ;;  %v102_v20 = vadd.f32 1.0, %v194_v17  ;;  %v105_v25 = vmul.f32 -0.5, %v194_v17  ;;  %v108_v39 = vand.u32 2147483647, %v194_v17 }
  0x33   :  { %v198_v21 = vpop.eup %197  ;;  %199 = vlog2.f32 %v93_v18  ;;  %v111_v22 = vadd.f32 1.0, %v196_v19  ;;  %v114_v27 = vmul.f32 -0.5, %v196_v19  ;;  %v97_v30 = vadd.f32 1.0, %v96_v24 }
  0x34   :  { %201 = vlog2.f32 %v102_v20  ;;  %v120_v23 = vadd.f32 1.0, %v198_v21  ;;  %v123_v31 = vmul.f32 -0.5, %v198_v21  ;;  %v106_v36 = vadd.f32 1.0, %v105_v25 }
  0x35   :  { %203 = vlog2.f32 %v111_v22  ;;  %v115_v40 = vadd.f32 1.0, %v114_v27  ;;  %v117_v43 = vand.u32 2147483647, %v196_v19  ;;  %v98_v46 = vmul.f32 %v192_v16, %v97_v30 }
  0x36   :  { %205 = vlog2.f32 %v120_v23  ;;  %v124_v47 = vadd.f32 1.0, %v123_v31  ;;  %vm317_vm0 = vcmp.lt.f32.partialorder %v99_v35, 0.0004427343  ;;  %v107_v51 = vmul.f32 %v194_v17, %v106_v36 }
  0x37   :  { %v126_v52 = vand.u32 2147483647, %v198_v21  ;;  %vm321_vm1 = vcmp.lt.f32.partialorder %v108_v39, 0.0004427343  ;;  %v116_v57 = vmul.f32 %v196_v19, %v115_v40  ;;  %vm118_vm2 = vcmp.lt.f32.partialorder %v117_v43, 0.0004427343 }
  0x38   :  { %v125_v63 = vmul.f32 %v198_v21, %v124_v47 }
  0x39   :  { %vm127_vm3 = vcmp.lt.f32.partialorder %v126_v52, 0.0004427343 }
  0x40   :  { %v200_v48 = vpop.eup %199 }
  0x41   :  { %v202_v53 = vpop.eup %201  ;;  %v95_v55 = vmul.f32 0.6931472, %v200_v48 }
  0x42   :  { %v204_v58 = vpop.eup %203  ;;  %v104_v60 = vmul.f32 0.6931472, %v202_v53 }
  0x43   :  { %v101_v61 = vsel %vm317_vm0, %v98_v46, %v95_v55  ;;  %v113_v62 = vmul.f32 0.6931472, %v204_v58  ;;  %v206_v0 = vpop.eup %205 }
  0x44   :  { %v110_v2 = vsel %vm321_vm1, %v107_v51, %v104_v60  ;;  %v129_v3 = vadd.f32 %v101_v61, %v73_v49  ;;  %v122_v5 = vmul.f32 0.6931472, %v206_v0 }
  0x45   :  { %v119_v4 = vsel %vm118_vm2, %v116_v57, %v113_v62  ;;  %v130_v6 = vadd.f32 %v110_v2, %v74_v54 }
  0x46   :  { %v131_v7 = vadd.f32 %v119_v4, %v75_v59  ;;  %v133_v8 = vsub.f32 0.0, %v129_v3  ;;  %v128_v9 = vsel %vm127_vm3, %v125_v63, %v122_v5 }
  0x47   :  { %v134_v10 = vsub.f32 0.0, %v130_v6  ;;  %v132_v11 = vadd.f32 %v128_v9, %v76_v1 }
  0x48   :  { %v135_v12 = vsub.f32 0.0, %v131_v7  ;;  %v137_v13 = vmul.f32 1.442695, %v133_v8 }
  0x49   :  { %v139_v14 = vmul.f32 1.442695, %v134_v10  ;;  %v136_v15 = vsub.f32 0.0, %v132_v11 }
  0x4a   :  { %207 = vpow2.f32 %v137_v13  ;;  %v141_v16 = vmul.f32 1.442695, %v135_v12 }
  0x4b   :  { %209 = vpow2.f32 %v139_v14  ;;  %v143_v17 = vmul.f32 1.442695, %v136_v15 }
  0x4c   :  { %211 = vpow2.f32 %v141_v16 }
  0x4d   :  { %213 = vpow2.f32 %v143_v17 }
  0x57   :  { %v208_v18 = vpop.eup %207 }
  0x58   :  { %v210_v19 = vpop.eup %209  ;;  %v145_v20 = vsub.f32 1.0, %v208_v18 }
  0x59   :  { %v212_v21 = vpop.eup %211  ;;  %v146_v22 = vsub.f32 1.0, %v210_v19 }
  0x5a   :  { %v147_v23 = vsub.f32 1.0, %v212_v21  ;;  %v149_v24 = vmul.f32 %v145_v20, %v145_v20  ;;  %v214_v25 = vpop.eup %213 }
  0x5b   :  { %v150_v26 = vmul.f32 %v146_v22, %v146_v22  ;;  %v148_v27 = vsub.f32 1.0, %v214_v25 }
  0x5c   :  { %v151_v28 = vmul.f32 %v147_v23, %v147_v23  ;;  %v153_v29 = vmul.f32 %v149_v24, %v149_v24 }
  0x5d   :  { %v154_v30 = vmul.f32 %v150_v26, %v150_v26  ;;  %v152_v31 = vmul.f32 %v148_v27, %v148_v27 }
  0x5e   :  { %v155_v32 = vmul.f32 %v151_v28, %v151_v28  ;;  %v157_v33 = vmul.f32 %v153_v29, %v129_v3 }
  0x5f   :  { %v156_v34 = vmul.f32 %v152_v31, %v152_v31  ;;  %v158_v35 = vmul.f32 %v154_v30, %v130_v6 }
  0x60   :  { %v159_v36 = vmul.f32 %v155_v32, %v131_v7 }
  0x61   :  { %v160_v37 = vmul.f32 %v156_v34, %v132_v11 }
  0x62   :  { %v163_v38 = vadd.f32 %v159_v36, %v157_v33 }
  0x63   :  { %v164_v39 = vadd.f32 %v160_v37, %v158_v35 }
  0x65   :  { %v166_v40 = vadd.f32 %v164_v39, %v163_v38 }
  0x67   :  { %168 = vst [vmem:[#allocation7] sm:$0xff] %v166_v40 }
  0x68   :  { %266 = shalt.err (!%p263_p0)
}
  0x69   :  { %178 = dma.vmem_to_hbm [thread:$0]  %s176_s1, 128, %s334_s2, [#allocation4]  }
  0x6a   :  { %279 = dma.done.wait [#allocation4], 128  }
  0x6b   :  { %280 = vsyncadd [#allocation4], 4294967168 }
  0x6c   :  { %182 = vsyncpa [#allocation3], 1 }
  0x6d   :  { %183 = vsyncpa [#allocation6], 1 }
  0x6e   :  { %184 = vsyncpa [#allocation4], 1 }

</bundles_post_ra>
